<compile_context>
chip_gen: v7x
topology: tpu7x:2x2x1
jax: 0.10.0
libtpu: 0.0.40
codegen_flags: <defaults>
</compile_context>

<pallas_src>
import functools

import jax
import jax.numpy as jnp
from jax.experimental import pallas as pl
from jax.experimental.pallas import tpu as pltpu


_SUBLANES = {1: 32, 2: 16, 4: 8}     # sublane packing per dtype itemsize
_SMALL_BYTES = 4 << 20               # below this, let XLA fuse a plain select


# ----------------------------------------------------------------------------
# Hardware budget / tiling helpers
# ----------------------------------------------------------------------------

@functools.lru_cache(maxsize=None)
def _tpu_budget():
    """Returns (vmem_limit_bytes, per_block_target_bytes, num_tensorcores)."""
    phys = 64 << 20          # conservative default (v7x per-TC physical VMEM)
    cores = None
    try:
        info = pltpu.get_tpu_info()
        for name in ("vmem_capacity_bytes", "vmem_size_bytes", "vmem_bytes"):
            v = getattr(info, name, None)
            if v:
                phys = int(v)
                break
        for name in ("num_cores", "core_count", "num_tensorcores",
                     "tensorcores_per_chip"):
            v = getattr(info, name, None)
            if v:
                cores = int(v)
                break
    except Exception:
        pass
    if cores is None:
        try:
            cores = int(getattr(jax.devices()[0], "num_cores", 0)) or None
        except Exception:
            cores = None
    if cores is None:
        cores = 2            # hedge: assume 2 TCs (v7x); costs ~0.35us elsewhere
    # 48 MiB scoped VMEM is comfortably below every generation's physical VMEM
    # and comfortably above 4 double-buffered 8 MiB blocks (+ headroom).
    vmem_limit = min(phys * 3 // 4, 48 << 20)
    block_target = min(8 << 20, vmem_limit // 6)
    return vmem_limit, block_target, max(1, cores)


def _largest_divisor_leq(n, cap):
    cap = max(1, min(n, cap))
    for d in range(cap, 0, -1):
        if n % d == 0:
            return d
    return 1


def _pick_rows(nrows, row_bytes, sub, target, cores):
    """Rows per block: multiple of the sublane pack, sized to `target` bytes,
    split so every TensorCore gets work; full extent if that is smaller."""
    tb = (max(1, target // max(1, row_bytes)) // sub) * sub
    tb = max(sub, tb)
    if cores > 1:
        per_core = (pl.cdiv(nrows, cores) // sub) * sub
        if per_core >= sub:
            tb = min(tb, per_core)
    return nrows if tb >= nrows else tb


# ----------------------------------------------------------------------------
# Box sampling and plain-XLA reference/fallback
# ----------------------------------------------------------------------------

def _sample_box(key, H, W, h_ratio, w_ratio):
    """Box coordinates exactly as BatchDrop.forward samples them."""
    # TODO(synk): Python round() (banker's rounding) may differ from PyTorch's
    # round() by 1 for exact .5 products; cosmetic only.
    rh = int(round(h_ratio * H))
    rw = int(round(w_ratio * W))
    kx, ky = jax.random.split(key)
    sx = jax.random.randint(kx, (), 0, H - rh + 1, dtype=jnp.int32)
    sy = jax.random.randint(ky, (), 0, W - rw + 1, dtype=jnp.int32)
    return sx, sy, rh, rw


def _keep_mask_hw(H, W, sx, sy, rh, rw, dtype):
    row = jnp.arange(H, dtype=jnp.int32)[:, None]
    col = jnp.arange(W, dtype=jnp.int32)[None, :]
    inside = (row >= sx) & (row < sx + rh) & (col >= sy) & (col < sy + rw)
    # Multiply by {0,1} (NOT jnp.where) so NaN/Inf inside the box propagate
    # exactly like PyTorch's x * mask.
    return (~inside).astype(dtype)


def _xla_drop(x, sx, sy, rh, rw):
    keep = _keep_mask_hw(x.shape[-2], x.shape[-1], sx, sy, rh, rw, x.dtype)
    return x * keep[None, None]


# ----------------------------------------------------------------------------
# Kernels
# ----------------------------------------------------------------------------

def _mask_mul_kernel(x_ref, keep_ref, o_ref):
    # x_ref: (TB, TL); keep_ref: (1, TL) resident mask -> broadcast multiply.
    o_ref[...] = x_ref[...] * keep_ref[...]


def _flat_box_kernel(box_ref, x_ref, o_ref, *, W, HW):
    # box_ref: SMEM int32[4] = [sx, sy, rh, rw]; x_ref/o_ref: (TB, L) flat tiles.
    # NOTE: assumes total element count < 2**31 (int32 flat indices).
    sx, sy, rh, rw = box_ref[0], box_ref[1], box_ref[2], box_ref[3]
    tb, L = x_ref.shape
    base = pl.program_id(0) * (tb * L)
    r = jax.lax.broadcasted_iota(jnp.int32, (tb, L), 0)
    c = jax.lax.broadcasted_iota(jnp.int32, (tb, L), 1)
    g = base + r * L + c                  # global flat element index
    in_img = g - (g // HW) * HW           # g % (H*W)   (HW, W are static)
    row = in_img // W
    col = in_img - row * W
    inside = (row >= sx) & (row < sx + rh) & (col >= sy) & (col < sy + rw)
    o_ref[...] = x_ref[...] * (~inside).astype(o_ref.dtype)


def _band_kernel(box_ref, x_ref, o_ref, *, BH, n_hblk):
    # Read-modify-write of one (TB, BH, W) row-band block that intersects the
    # dropped box; everything outside the visited bands stays untouched in HBM
    # because the output aliases the input.
    sx, sy, rh, rw = box_ref[0], box_ref[1], box_ref[2], box_ref[3]
    hb = jnp.minimum(sx // BH + pl.program_id(1), n_hblk - 1)   # == index_map
    h0 = hb * BH
    _, bh, w = x_ref.shape
    row = h0 + jax.lax.broadcasted_iota(jnp.int32, (1, bh, w), 1)
    col = jax.lax.broadcasted_iota(jnp.int32, (1, bh, w), 2)
    inside = (row >= sx) & (row < sx + rh) & (col >= sy) & (col < sy + rw)
    o_ref[...] = x_ref[...] * (~inside).astype(o_ref.dtype)


# ----------------------------------------------------------------------------
# pallas_call wrappers (one per path)
# ----------------------------------------------------------------------------

def _drop_rowmajor(x, sx, sy, rh, rw, *, donate):
    """Layout A: (N*C, H*W) lane-dense streaming with a resident mask input."""
    N, C, H, W = x.shape
    NC, HW = N * C, H * W
    itemsize = jnp.dtype(x.dtype).itemsize
    sub = _SUBLANES.get(itemsize, 8)
    vmem_limit, target, cores = _tpu_budget()

    keep = _keep_mask_hw(H, W, sx, sy, rh, rw, x.dtype).reshape(1, HW)

    tl = HW
    if HW * sub * itemsize > target:      # lane-tile only for huge spatial maps
        cap = max(1, target // (128 * sub * itemsize))
        tl = 128 * _largest_divisor_leq(HW // 128, cap)
    tb = _pick_rows(NC, tl * itemsize, sub, target, cores)

    x_flat = x.reshape(NC, HW)            # row-major: free reshape
    # Lane axis outermost so the (1, tl) mask block stays resident across the
    # inner row sweep (DMA'd once per lane tile, not once per grid step).
    grid = (pl.cdiv(HW, tl), pl.cdiv(NC, tb))
    out = pl.pallas_call(
        _mask_mul_kernel,
        out_shape=jax.ShapeDtypeStruct((NC, HW), x.dtype),
        grid=grid,
        in_specs=[pl.BlockSpec((tb, tl), lambda j, i: (i, j)),
                  pl.BlockSpec((1, tl), lambda j, i: (0, j))],
        out_specs=pl.BlockSpec((tb, tl), lambda j, i: (i, j)),
        compiler_params=pltpu.CompilerParams(
            dimension_semantics=("parallel", "parallel"),
            vmem_limit_bytes=vmem_limit),
        cost_estimate=pl.CostEstimate(flops=NC * HW, transcendentals=0,
                                      bytes_accessed=2 * NC * HW * itemsize),
        input_output_aliases=({0: 0} if donate else {}),   # x_flat is operand 0
    )(x_flat, keep)
    return out.reshape(N, C, H, W)


def _drop_flat(x, sx, sy, rh, rw, *, donate):
    """Layout B: flatten to (total/L, L), L a 128-multiple divisor of total;
    decode (h, w) from the global flat index in-kernel (non-128 H*W maps)."""
    N, C, H, W = x.shape
    HW = H * W
    total = x.size
    itemsize = jnp.dtype(x.dtype).itemsize
    sub = _SUBLANES.get(itemsize, 8)
    vmem_limit, target, cores = _tpu_budget()

    cap = max(1, target // (128 * sub * itemsize))
    L = 128 * _largest_divisor_leq(total // 128, cap)
    rows = total // L
    tb = _pick_rows(rows, L * itemsize, sub, target, cores)

    box = jnp.stack([sx, sy, jnp.int32(rh), jnp.int32(rw)])
    x_flat = x.reshape(rows, L)
    out = pl.pallas_call(
        functools.partial(_flat_box_kernel, W=W, HW=HW),
        out_shape=jax.ShapeDtypeStruct((rows, L), x.dtype),
        grid_spec=pltpu.PrefetchScalarGridSpec(
            num_scalar_prefetch=1,
            grid=(pl.cdiv(rows, tb),),
            in_specs=[pl.BlockSpec((tb, L), lambda i, box_ref: (i, 0))],
            out_specs=pl.BlockSpec((tb, L), lambda i, box_ref: (i, 0))),
        compiler_params=pltpu.CompilerParams(
            dimension_semantics=("parallel",),
            vmem_limit_bytes=vmem_limit),
        cost_estimate=pl.CostEstimate(flops=12 * total, transcendentals=0,
                                      bytes_accessed=2 * total * itemsize),
        # Operand 0 is the scalar-prefetch box; x_flat is operand 1.
        input_output_aliases=({1: 0} if donate else {}),
    )(box, x_flat)
    return out.reshape(N, C, H, W)


def _drop_box_band(x, sx, sy, rh, rw, *, BH, n_hblk, nbb):
    """donate=True fast path: only the row-band containing the box is read,
    masked and written back in place (output aliases input); all other HBM
    data stays untouched. Traffic ~ 2*N*C*band*W instead of 2*N*C*H*W."""
    N, C, H, W = x.shape
    NC = N * C
    itemsize = jnp.dtype(x.dtype).itemsize
    vmem_limit, target, cores = _tpu_budget()

    tbn = max(1, target // max(1, BH * W * itemsize))
    if cores > 1:
        tbn = min(tbn, max(1, pl.cdiv(NC, cores)))
    tbn = min(tbn, NC)

    def band_map(i, j, box_ref):
        # Same clamp as in the kernel body. A clamped (duplicate) block simply
        # rewrites identical values; the band axis is marked "arbitrary".
        return (i, jnp.minimum(box_ref[0] // BH + j, n_hblk - 1), 0)

    box = jnp.stack([sx, sy, jnp.int32(rh), jnp.int32(rw)])
    x3 = x.reshape(NC, H, W)
    out = pl.pallas_call(
        functools.partial(_band_kernel, BH=BH, n_hblk=n_hblk),
        out_shape=jax.ShapeDtypeStruct((NC, H, W), x.dtype),
        grid_spec=pltpu.PrefetchScalarGridSpec(
            num_scalar_prefetch=1,
            grid=(pl.cdiv(NC, tbn), nbb),
            in_specs=[pl.BlockSpec((tbn, BH, W), band_map)],
            out_specs=pl.BlockSpec((tbn, BH, W), band_map)),
        compiler_params=pltpu.CompilerParams(
            dimension_semantics=("parallel", "arbitrary"),
            vmem_limit_bytes=vmem_limit),
        cost_estimate=pl.CostEstimate(
            flops=NC * nbb * BH * W, transcendentals=0,
            bytes_accessed=2 * NC * nbb * BH * W * itemsize),
        # Operand 0 is the scalar-prefetch box; x3 is operand 1.
        input_output_aliases={1: 0},
    )(box, x3)
    return out.reshape(N, C, H, W)


# ----------------------------------------------------------------------------
# Public entry point (BatchDrop.forward equivalent)
# ----------------------------------------------------------------------------

def batch_drop(x, h_ratio, w_ratio, key, *, training=True, donate=False,
               use_pallas=None):
    """Pallas implementation of BatchDrop.forward.

    x: (N, C, H, W). In training mode zeroes a random (rh x rw) spatial box,
    identical across batch and channel (like the PyTorch module); in eval mode
    returns x unchanged. `key` replaces Python's random.randint sampling.
    """
    if not training:
        return x

    N, C, H, W = x.shape
    sx, sy, rh, rw = _sample_box(key, H, W, h_ratio, w_ratio)

    itemsize = jnp.dtype(x.dtype).itemsize
    if use_pallas is None:
        use_pallas = x.size * itemsize >= _SMALL_BYTES
    if not use_pallas:
        return _xla_drop(x, sx, sy, rh, rw)   # tiny: let XLA fuse the select

    NC, HW = N * C, H * W
    sub = _SUBLANES.get(itemsize, 8)

    # donate: in-place box-band rewrite when the band is a strict subset of H.
    BH = sub if H >= sub else H
    n_hblk = pl.cdiv(H, BH)
    nbb = min(pl.cdiv(rh, BH) + 1, n_hblk)
    if donate and nbb * BH < H:
        return _drop_box_band(x, sx, sy, rh, rw, BH=BH, n_hblk=n_hblk, nbb=nbb)

    if HW % 128 == 0:
        return _drop_rowmajor(x, sx, sy, rh, rw, donate=donate)
    if (NC * HW) % 128 == 0:
        return _drop_flat(x, sx, sy, rh, rw, donate=donate)
    # TODO(synk): shapes whose total element count is not a multiple of 128
    # (rare, tiny) have no lane-dense layout here; fall back to plain XLA.
    return _xla_drop(x, sx, sy, rh, rw)


def _reference(x, h_ratio, w_ratio, key):
    H, W = x.shape[-2:]
    sx, sy, rh, rw = _sample_box(key, H, W, h_ratio, w_ratio)
    return _xla_drop(x, sx, sy, rh, rw)


if __name__ == "__main__":
    root = jax.random.PRNGKey(0)
    k1, k2, k3, kb1, kb2, kb3 = jax.random.split(root, 6)

    # Case 1: H*W multiple of 128 -> row-major streaming kernel (+ aliased).
    x1 = jax.random.normal(k1, (2, 4, 16, 16), dtype=jnp.float32)
    ref1 = _reference(x1, 0.3, 0.3, kb1)
    out1 = jax.block_until_ready(
        batch_drop(x1, 0.3, 0.3, kb1, training=True, use_pallas=True))
    assert jnp.allclose(out1, ref1), "row-major kernel mismatch"
    out1d = jax.block_until_ready(
        batch_drop(x1 + 0.0, 0.3, 0.3, kb1, training=True, use_pallas=True,
                   donate=True))
    assert jnp.allclose(out1d, ref1), "aliased row-major kernel mismatch"

    # Case 2: 14x14 map (H*W % 128 != 0) -> flat lane-dense kernel.
    x2 = jax.random.normal(k2, (4, 8, 14, 14), dtype=jnp.float32)
    ref2 = _reference(x2, 0.3, 0.3, kb2)
    out2 = jax.block_until_ready(
        batch_drop(x2, 0.3, 0.3, kb2, training=True, use_pallas=True))
    assert jnp.allclose(out2, ref2), "flat kernel mismatch"

    # Case 3: donate=True with a proper sub-band -> in-place box-band kernel.
    x3 = jax.random.normal(k3, (2, 4, 24, 24), dtype=jnp.float32)
    ref3 = _reference(x3, 0.25, 0.25, kb3)
    out3 = jax.block_until_ready(
        batch_drop(x3 + 0.0, 0.25, 0.25, kb3, training=True, use_pallas=True,
                   donate=True))
    assert jnp.allclose(out3, ref3), "box-band (donate) kernel mismatch"
    out3s = jax.block_until_ready(
        batch_drop(x3, 0.25, 0.25, kb3, training=True, use_pallas=True))
    assert jnp.allclose(out3s, ref3), "flat kernel (24x24) mismatch"

    # Auto dispatch (tiny tensor -> XLA fallback) and eval-mode identity.
    assert jnp.allclose(batch_drop(x1, 0.3, 0.3, kb1, training=True), ref1)
    assert jnp.allclose(batch_drop(x1, 0.3, 0.3, kb1, training=False), x1)

    print("KERNEL_OK")
</pallas_src>

<mosaic_0001>
module attributes {stable_mosaic.version = 11 : i64} {
  func.func @_mask_mul_kernel(%arg0: i32, %arg1: i32, %arg2: memref<8x256xf32, #tpu.memory_space<vmem>>, %arg3: memref<1x256xf32, #tpu.memory_space<vmem>>, %arg4: memref<8x256xf32, #tpu.memory_space<vmem>>) attributes {dimension_semantics = [#tpu.dimension_semantics<parallel>, #tpu.dimension_semantics<parallel>], iteration_bounds = array<i64: 1, 1>, scalar_prefetch = 0 : i64, scratch_operands = 0 : i64, tpu.core_type = #tpu.core_type<tc>, window_params = [{transform_indices = @transform_0, window_bounds = array<i64: 8, 256>}, {transform_indices = @transform_1, window_bounds = array<i64: 1, 256>}, {transform_indices = @transform_2, window_bounds = array<i64: 8, 256>}]} {
    %c0 = arith.constant 0 : index
    %c0_0 = arith.constant 0 : index
    %0 = vector.load %arg2[%c0, %c0_0] : memref<8x256xf32, #tpu.memory_space<vmem>>, vector<8x256xf32>
    %c0_1 = arith.constant 0 : index
    %c0_2 = arith.constant 0 : index
    %1 = vector.load %arg3[%c0_1, %c0_2] : memref<1x256xf32, #tpu.memory_space<vmem>>, vector<1x256xf32>
    %2 = vector.broadcast %1 : vector<1x256xf32> to vector<8x256xf32>
    %3 = arith.mulf %0, %2 : vector<8x256xf32>
    %c0_3 = arith.constant 0 : index
    %c0_4 = arith.constant 0 : index
    %4 = vector.load %arg4[%c0_3, %c0_4] : memref<8x256xf32, #tpu.memory_space<vmem>>, vector<8x256xf32>
    tpu.vector_store %arg4[%c0_3, %c0_4], %3 {strides = array<i32>} : memref<8x256xf32, #tpu.memory_space<vmem>>, vector<8x256xf32>,
    return
  }
  func.func @transform_0(%arg0: i32, %arg1: i32) -> (i32, i32) {
    %c0_i32 = arith.constant 0 : i32
    return %arg1, %arg0 : i32, i32
  }
  func.func @transform_1(%arg0: i32, %arg1: i32) -> (i32, i32) {
    %c0_i32 = arith.constant 0 : i32
    %c0_i32_0 = arith.constant 0 : i32
    return %c0_i32, %arg0 : i32, i32
  }
  func.func @transform_2(%arg0: i32, %arg1: i32) -> (i32, i32) {
    %c0_i32 = arith.constant 0 : i32
    return %arg1, %arg0 : i32, i32
  }
}

</mosaic_0001>

<bundles_post_ra>
// kernel: tpu_custom_call.1
= control target key start
LH: loop header
LB: loop body
LE: loop exit
PB: predicated region body
PF: predicated region fallthrough
CT: control target
= control target key end

     0   :  { %7 = vsyncpa [#allocation3], 0  ;;  %s151_s0 = inlined_call_operand.hbm [shape: f32[8,256], index: 0, kind: input, shape index: {}]   ;;  %s152_s1 = inlined_call_operand.vmem [shape: f32[1,256], index: 1, kind: input, shape index: {}]   ;;  %s153_s2 = inlined_call_operand.hbm [shape: f32[8,256], index: 2, kind: output, shape index: {}]  }
   0x1   :  { %8 = vsyncpa [#allocation4], 0  ;;  %s107_s9 = smov [#allocation2]   ;;  %s59_s13 = scalar_lea.hbm %s151_s0, 256 }
   0x2   :  { %s15_s10 = sshll.u32 %s107_s9, 4  ;;  %p60_p0 = scmp.ne.s32.totalorder %s151_s0, %s59_s13  ;;  %s16_s10 = int_to_ptr.vmem [resolvable:$true] %s15_s10 }
   0x3   :  { %p63_p1 = scmp.lt.u32.totalorder %s59_s13, %s151_s0 }
   0x5   :  { %p65_p2 = pnand %p63_p1, %p60_p0 }
   0x7   :  { %68 = shalt.err (!%p65_p2)
}
   0x8   :  { %s69_s18 = scalar_lea.vmem %s16_s10, 256  ;;  %p74_p4 = scmp.lt.s32.totalorder %s16_s10, %s16_s10 }
   0x9   :  { %p70_p3 = scmp.ne.s32.totalorder %s16_s10, %s69_s18  ;;  %p75_p5 = scmp.lt.s32.totalorder %s69_s18, %s69_s18 }
   0xb   :  { %p76_p6 = por %p75_p5, %p74_p4 }
   0xd   :  { %p77_p7 = pnand %p76_p6, %p70_p3 }
   0xf   :  { %80 = shalt.err (!%p77_p7)
}
  0x10   :  { %18 = dma.hbm_to_vmem [thread:$0]  %s151_s0, 256, %s16_s10, [#allocation3]  }
  0x11   :  { %103 = dma.done.wait [#allocation3], 256  }
  0x12   :  { %104 = vsyncadd [#allocation3], 4294967040  ;;  %v28_v0 = vlaneseq  ;;  %v24_v4 = vld [vmem:[#allocation2] sm:$0xff]  ;;  %v25_v6 = vld [vmem:[#allocation2 + $0x8] sm:$0xff]  ;;  %s108_s23 = smov [#allocation5]  }
  0x13   :  { %v26_v5 = vld [vmem:[%s152_s1] sm:$0x3]  ;;  %s48_s24 = sshll.u32 %s108_s23, 4  ;;  %s49_s24 = int_to_ptr.vmem [resolvable:$true] %s48_s24 }
  0x14   :  { %v29_v1 = vshrl.u32 %v28_v0, 7  ;;  %s81_s0 = scalar_lea.vmem %s49_s24, 256  ;;  %p86_p9 = scmp.lt.s32.totalorder %s49_s24, %s49_s24 }
  0x15   :  { %p82_p8 = scmp.ne.s32.totalorder %s49_s24, %s81_s0  ;;  %p87_p10 = scmp.lt.s32.totalorder %s81_s0, %s81_s0 }
  0x16   :  { %v30_v2 = vsub.s32 0, %v29_v1  ;;  %v34_v3 = vsub.s32 1, %v29_v1 }
  0x17   :  { %p88_p11 = por %p87_p10, %p86_p9 }
  0x18   :  { %v31_v7 = vrot.slane %v26_v5, %v30_v2  ;;  %v35_v8 = vrot.slane %v26_v5, %v34_v3 }
  0x19   :  { %p89_p12 = pnand %p88_p11, %p82_p8 }
  0x1a   :  { %v38_v9 = vmul.f32 %v31_v7, %v24_v4  ;;  %v39_v10 = vmul.f32 %v35_v8, %v25_v6 }
  0x1c   :  { %40 = vst [vmem:[#allocation5] sm:$0xff] %v38_v9  ;;  %41 = vst [vmem:[#allocation5 + $0x8] sm:$0xff] %v39_v10 }
  0x1d   :  { %92 = shalt.err (!%p89_p12)
}
  0x1e   :  { %s93_s1 = scalar_lea.hbm %s153_s2, 256 }
  0x1f   :  { %p94_p13 = scmp.ne.s32.totalorder %s153_s2, %s93_s1  ;;  %p97_p0 = scmp.lt.u32.totalorder %s93_s1, %s153_s2 }
  0x21   :  { %p99_p1 = pnand %p97_p0, %p94_p13 }
  0x23   :  { %102 = shalt.err (!%p99_p1)
}
  0x24   :  { %51 = dma.vmem_to_hbm [thread:$0]  %s49_s24, 256, %s153_s2, [#allocation4]  }
  0x25   :  { %105 = dma.done.wait [#allocation4], 256  }
  0x26   :  { %106 = vsyncadd [#allocation4], 4294967040 }
  0x27   :  { %55 = vsyncpa [#allocation3], 1 }
  0x28   :  { %56 = vsyncpa [#allocation4], 1 }

</bundles_post_ra>
